<compile_context>
chip_gen: v7x
topology: tpu7x:2x2x1
jax: 0.10.0
libtpu: 0.0.40
codegen_flags: <defaults>
</compile_context>

<pallas_src>
import functools

import jax
import jax.numpy as jnp
from jax import lax
from jax.experimental import pallas as pl
from jax.experimental.pallas import tpu as pltpu


def _round_up(x, m):
    return ((x + m - 1) // m) * m


# ----------------------------------------------------------------------------
# Pallas kernel: one M-tile of  (TM, K) @ (K, N) + bias [+ leaky-relu]
# ----------------------------------------------------------------------------
def _matmul_bias_lrelu_kernel(x_ref, w_ref, b_ref, o_ref, *, slope, apply_lrelu):
    """x_ref: (TM, K) bf16, w_ref: (K, N) bf16, b_ref: (1, N) f32, o_ref: (TM, N) f32."""
    acc = jnp.dot(x_ref[...], w_ref[...], preferred_element_type=jnp.float32)
    acc = acc + b_ref[...]
    if apply_lrelu:
        acc = jnp.where(acc >= 0.0, acc, slope * acc)
    o_ref[...] = acc.astype(o_ref.dtype)


def conv_kx1_layer(x, w, b, *, stride, slope, apply_lrelu, tile_m=256):
    """Conv2d(Cin, Cout, (k,1), (stride,1), padding=(k//2,0)) [+ leaky_relu].

    x: (B, P, H, Cin) channels-last;  w: (k, Cin, Cout);  b: (Cout,).
    Returns (B, P, H_out, Cout) float32.
    """
    B, P, H, Cin = x.shape
    k, _, Cout = w.shape
    pad = k // 2  # matches PyTorch for the odd kernel sizes used by this module
    H_out = (H + 2 * pad - k) // stride + 1
    K = k * Cin

    # --- im2col glue (data movement only): (B, P, H_out, k*Cin), tap-major last dim
    xp = jnp.pad(x, ((0, 0), (0, 0), (pad, pad), (0, 0)))
    taps = jnp.concatenate(
        [xp[:, :, dk:dk + (H_out - 1) * stride + 1:stride, :] for dk in range(k)],
        axis=-1,
    )

    M = B * P * H_out
    tm = min(tile_m, _round_up(M, 8))        # tile along M (sublane-aligned)
    M_pad = _round_up(M, tm)                 # pad M to a multiple of the tile
    N_pad = _round_up(Cout, 128)             # lane-dense output stores

    taps = taps.reshape(M, K)
    if M_pad != M:
        taps = jnp.pad(taps, ((0, M_pad - M), (0, 0)))
    taps = taps.astype(jnp.bfloat16)

    w_flat = w.reshape(K, Cout)              # w_flat[dk*Cin + ci, co] = w[dk, ci, co]
    b_row = b.reshape(1, Cout)
    if N_pad != Cout:
        w_flat = jnp.pad(w_flat, ((0, 0), (0, N_pad - Cout)))
        b_row = jnp.pad(b_row, ((0, 0), (0, N_pad - Cout)))
    w_flat = w_flat.astype(jnp.bfloat16)
    b_row = b_row.astype(jnp.float32)

    grid = (M_pad // tm,)
    out = pl.pallas_call(
        functools.partial(
            _matmul_bias_lrelu_kernel, slope=slope, apply_lrelu=apply_lrelu
        ),
        out_shape=jax.ShapeDtypeStruct((M_pad, N_pad), jnp.float32),
        grid=grid,
        in_specs=[
            pl.BlockSpec((tm, K), lambda i: (i, 0)),     # taps tile, pipelined over M
            pl.BlockSpec((K, N_pad), lambda i: (0, 0)),  # weights: DMA'd once, resident
            pl.BlockSpec((1, N_pad), lambda i: (0, 0)),  # bias: resident
        ],
        out_specs=pl.BlockSpec((tm, N_pad), lambda i: (i, 0)),
        compiler_params=pltpu.CompilerParams(
            dimension_semantics=("parallel",),           # shard M tiles across TCs (v7x)
            vmem_limit_bytes=48 * 1024 * 1024,           # <= 64 MiB physical on v7x
        ),
    )(taps, w_flat, b_row)

    return out[:M, :Cout].reshape(B, P, H_out, Cout)


# ----------------------------------------------------------------------------
# Deterministic parameter construction (weight_norm folded into effective w)
# ----------------------------------------------------------------------------
def make_params(key, kernel_size=5, in_channels=1):
    layer_defs = [
        (in_channels, 32, kernel_size, 3),
        (32, 128, kernel_size, 3),
        (128, 512, kernel_size, 3),
        (512, 1024, kernel_size, 3),
        (1024, 1024, kernel_size, 1),
    ]
    params = []
    for cin, cout, k, s in layer_defs:
        key, kw, kb = jax.random.split(key, 3)
        scale = 0.5 / (k * cin) ** 0.5
        w = jax.random.normal(kw, (k, cin, cout), jnp.float32) * scale
        b = jax.random.normal(kb, (cout,), jnp.float32) * 0.01
        params.append((w, b, s))
    # conv_post: Conv2d(1024, 1, (3,1), 1, padding=(1,0))
    key, kw, kb = jax.random.split(key, 3)
    k, cin = 3, 1024
    w = jax.random.normal(kw, (k, cin, 1), jnp.float32) * (0.5 / (k * cin) ** 0.5)
    b = jax.random.normal(kb, (1,), jnp.float32) * 0.01
    post = (w, b, 1)
    return params, post


# ----------------------------------------------------------------------------
# Full DiscriminatorP forward (Pallas-backed)
# ----------------------------------------------------------------------------
def discriminator_p_forward(x, params, post, *, period, lrelu_slope=0.1):
    """x: (B, T) float32 waveform.  Returns (logits (B, H*period), fmap list in NCHW)."""
    B, T = x.shape
    if T % period != 0:
        n_pad = period - T % period
        x = jnp.pad(x, ((0, 0), (0, n_pad)), mode="reflect")
        T = T + n_pad
    # torch: x.view(b, 1, T//period, period)  ->  channels-last (B, P, H, 1)
    h = x.reshape(B, T // period, period)          # (B, H, P)
    h = jnp.transpose(h, (0, 2, 1))[..., None]     # (B, P, H, 1)

    fmap = []
    for i, (w, b, s) in enumerate(params):
        h = conv_kx1_layer(h, w, b, stride=s, slope=lrelu_slope, apply_lrelu=True)
        if i > 0:
            fmap.append(jnp.transpose(h, (0, 3, 2, 1)))  # back to NCHW (B, C, H, P)

    # TODO(synk): cond_embedding_id / nn.Embedding conditioning path not implemented
    # (module default num_embeddings=None => h_cond = 0, matching the reference).
    w, b, s = post
    h = conv_kx1_layer(h, w, b, stride=s, slope=lrelu_slope, apply_lrelu=False)
    out_nchw = jnp.transpose(h, (0, 3, 2, 1))      # (B, 1, H_final, period)
    fmap.append(out_nchw)
    logits = out_nchw.reshape(B, -1)               # torch.flatten(x, 1, -1)
    return logits, fmap


# ----------------------------------------------------------------------------
# Pure-JAX reference (NCHW, lax.conv, same bf16-in / f32-acc precision)
# ----------------------------------------------------------------------------
def reference_forward(x, params, post, *, period, lrelu_slope=0.1):
    B, T = x.shape
    if T % period != 0:
        n_pad = period - T % period
        x = jnp.pad(x, ((0, 0), (0, n_pad)), mode="reflect")
        T = T + n_pad
    h = x.reshape(B, 1, T // period, period)

    def conv(h, w, b, stride):
        k = w.shape[0]
        w_oihw = jnp.transpose(w, (2, 1, 0))[..., None]  # (Cout, Cin, k, 1)
        out = lax.conv_general_dilated(
            h.astype(jnp.bfloat16), w_oihw.astype(jnp.bfloat16),
            window_strides=(stride, 1),
            padding=((k // 2, k // 2), (0, 0)),
            dimension_numbers=("NCHW", "OIHW", "NCHW"),
            preferred_element_type=jnp.float32,
        )
        return out + b.reshape(1, -1, 1, 1)

    fmap = []
    for i, (w, b, s) in enumerate(params):
        h = conv(h, w, b, s)
        h = jnp.where(h >= 0, h, lrelu_slope * h)
        if i > 0:
            fmap.append(h)
    w, b, s = post
    h = conv(h, w, b, s)
    fmap.append(h)
    return h.reshape(B, -1), fmap


if __name__ == "__main__":
    key = jax.random.PRNGKey(0)
    kx, kp = jax.random.split(key)

    period = 4
    B, T = 2, 1294  # T % period != 0 -> exercises the reflect-pad branch; M > 256 on
                    # the first layers -> exercises the multi-tile grid path.
    x = jax.random.normal(kx, (B, T), jnp.float32)
    params, post = make_params(kp)

    logits, fmap = discriminator_p_forward(x, params, post, period=period)
    logits = jax.block_until_ready(logits)
    fmap = jax.block_until_ready(fmap)

    ref_logits, ref_fmap = reference_forward(x, params, post, period=period)
    ref_logits = jax.block_until_ready(ref_logits)

    # fmap entries: layers i>0 (4 of them) + conv_post output = 5 (matches PyTorch).
    assert len(fmap) == len(ref_fmap) == 5, (len(fmap), len(ref_fmap))
    assert logits.shape == ref_logits.shape, (logits.shape, ref_logits.shape)
    for a, r in zip(fmap, ref_fmap):
        assert a.shape == r.shape, (a.shape, r.shape)
        assert jnp.allclose(a, r, rtol=1e-2, atol=1e-2)
    assert jnp.allclose(logits, ref_logits, rtol=1e-2, atol=1e-2)

    print("KERNEL_OK")
</pallas_src>

<mosaic_0001>
module attributes {stable_mosaic.version = 11 : i64} {
  func.func @_matmul_bias_lrelu_kernel(%arg0: i32, %arg1: memref<256x5xbf16, #tpu.memory_space<vmem>>, %arg2: memref<5x128xbf16, #tpu.memory_space<vmem>>, %arg3: memref<1x128xf32, #tpu.memory_space<vmem>>, %arg4: memref<256x128xf32, #tpu.memory_space<vmem>>) attributes {dimension_semantics = [#tpu.dimension_semantics<parallel>], iteration_bounds = array<i64: 4>, scalar_prefetch = 0 : i64, scratch_operands = 0 : i64, tpu.core_type = #tpu.core_type<tc>, window_params = [{transform_indices = @transform_0, window_bounds = array<i64: 256, 5>}, {pipeline_mode = #tpu.pipeline_mode<synchronous>, transform_indices = @transform_1, window_bounds = array<i64: 5, 128>}, {pipeline_mode = #tpu.pipeline_mode<synchronous>, transform_indices = @transform_2, window_bounds = array<i64: 1, 128>}, {transform_indices = @transform_3, window_bounds = array<i64: 256, 128>}]} {
    %c0 = arith.constant 0 : index
    %c0_0 = arith.constant 0 : index
    %0 = vector.load %arg1[%c0, %c0_0] : memref<256x5xbf16, #tpu.memory_space<vmem>>, vector<256x5xbf16>
    %c0_1 = arith.constant 0 : index
    %c0_2 = arith.constant 0 : index
    %1 = vector.load %arg2[%c0_1, %c0_2] : memref<5x128xbf16, #tpu.memory_space<vmem>>, vector<5x128xbf16>
    %cst = arith.constant dense<0.000000e+00> : vector<256x128xf32>
    %2 = tpu.matmul %0, %1, %cst {dimension_numbers = #tpu.dot_dimension_numbers<[1], [0], [0], [1], [0, 0, 1, 1], [], []>} : vector<256x5xbf16>, vector<5x128xbf16>, vector<256x128xf32> -> vector<256x128xf32>
    %c0_3 = arith.constant 0 : index
    %c0_4 = arith.constant 0 : index
    %3 = vector.load %arg3[%c0_3, %c0_4] : memref<1x128xf32, #tpu.memory_space<vmem>>, vector<1x128xf32>
    %4 = vector.broadcast %3 : vector<1x128xf32> to vector<256x128xf32>
    %5 = arith.addf %2, %4 : vector<256x128xf32>
    %cst_5 = arith.constant 0.000000e+00 : f32
    %6 = vector.broadcast %cst_5 : f32 to vector<256x128xf32>
    %7 = arith.cmpf oge, %5, %6 : vector<256x128xf32>
    %cst_6 = arith.constant 1.000000e-01 : f32
    %8 = vector.broadcast %cst_6 : f32 to vector<256x128xf32>
    %9 = arith.mulf %8, %5 : vector<256x128xf32>
    %10 = arith.select %7, %5, %9 : vector<256x128xi1>, vector<256x128xf32>
    %c0_7 = arith.constant 0 : index
    %c0_8 = arith.constant 0 : index
    %11 = vector.load %arg4[%c0_7, %c0_8] : memref<256x128xf32, #tpu.memory_space<vmem>>, vector<256x128xf32>
    tpu.vector_store %arg4[%c0_7, %c0_8], %10 {strides = array<i32>} : memref<256x128xf32, #tpu.memory_space<vmem>>, vector<256x128xf32>,
    return
  }
  func.func @transform_0(%arg0: i32) -> (i32, i32) {
    %c0_i32 = arith.constant 0 : i32
    %c0_i32_0 = arith.constant 0 : i32
    return %arg0, %c0_i32 : i32, i32
  }
  func.func @transform_1(%arg0: i32) -> (i32, i32) {
    %c0_i32 = arith.constant 0 : i32
    %c0_i32_0 = arith.constant 0 : i32
    %c0_i32_1 = arith.constant 0 : i32
    return %c0_i32, %c0_i32_0 : i32, i32
  }
  func.func @transform_2(%arg0: i32) -> (i32, i32) {
    %c0_i32 = arith.constant 0 : i32
    %c0_i32_0 = arith.constant 0 : i32
    %c0_i32_1 = arith.constant 0 : i32
    return %c0_i32, %c0_i32_0 : i32, i32
  }
  func.func @transform_3(%arg0: i32) -> (i32, i32) {
    %c0_i32 = arith.constant 0 : i32
    %c0_i32_0 = arith.constant 0 : i32
    return %arg0, %c0_i32 : i32, i32
  }
}

</mosaic_0001>

<bundles_post_ra>
// kernel: tpu_custom_call.1
= control target key start
LH: loop header
LB: loop body
LE: loop exit
PB: predicated region body
PF: predicated region fallthrough
CT: control target
= control target key end

     0   :  { %8 = vsyncpa [#allocation3], 0  ;;  %s1174_s0 = inlined_call_operand.vmem [shape: bf16[1024,5], index: 0, kind: input, shape index: {}]   ;;  %s1175_s1 = inlined_call_operand.vmem [shape: bf16[5,128], index: 1, kind: input, shape index: {}]   ;;  %s1176_s2 = inlined_call_operand.vmem [shape: f32[1,128], index: 2, kind: input, shape index: {}]   ;;  %s1177_s3 = inlined_call_operand.hbm [shape: f32[1024,128], index: 3, kind: output, shape index: {}]  }
   0x1   :  { %10 = vsyncpa [#allocation3 + $0x1], 0  ;;  %s959_s12 = smov 0   ;;  %s961_s13 = smov 0  }
   0x2   :  { %s963_s14 = smov 0   ;;  %s965_s15 = smov 0  }
   0x3 LB: > { %s980_s16 = sadd.s32 4294967295, %s933_s15   ;;  %s714_s17 = sadd.s32 4294967294, %s933_s15   ;;  %s933_s15 = sphi %s965_s15, %s1183_s15   ;;  %s929_s14 = sphi %s963_s14, %s1182_s14   ;;  %s925_s13 = sphi %s961_s13, %s1181_s13   ;;  %s921_s12 = sphi %s959_s12, %s1180_s12  }
   0x4   : > { %s984_s18 = sadd.s32 1, %s933_s15   ;;  %s91_s19 = sadd.s32 1, %s929_s14 }
   0x5   : > { %s88_s20 = ssub.s32 %s933_s15, %s984_s18  ;;  %p101_p0 = scmp.ne.s32.totalorder %s929_s14, %s925_s13 }
   0x6   : > { %p89_p1 = scmp.eq.s32.totalorder %s88_s20, 0  ;;  %p102_p2 = scmp.eq.s32.totalorder %s980_s16, 3 }
   0x7   : > { %p107_p3 = scmp.ne.s32.totalorder %s925_s13, %s921_s12  ;;  %p108_p4 = scmp.eq.s32.totalorder %s714_s17, 3 }
   0x8   : > { %s995_s21 = scalar_select %p89_p1, %s929_s14, %s91_s19  }
   0x9   : > { %p997_p5 = por %p102_p2, %p101_p0  ;;  %p1001_p6 = por %p108_p4, %p107_p3 }
   0xa   : > { %p717_p7 = scmp.ge.s32.totalorder %s933_s15, 1  ;;  %p141_p8 = scmp.lt.s32.totalorder %s933_s15, 5 }
   0xc   : > { %p142_p9 = pnand %p717_p7, %p141_p8 }
   0xd   : > { %v205_v0 = vld [vmem:[%s1175_s1] sm:$0x7] (!%p142_p9)  ;;  %vm342_vm0 = vcmask (!%p142_p9), 1041408   ;;  %vm343_vm1 = vcmask (!%p142_p9), 1042432   ;;  %s719_s26 = sshll.u32 (!%p142_p9), %s980_s16, 5  ;;  %v935_v1 = vmov (!%p142_p9), 65535  }
   0xe   : > { %145 = sbr.rel (%p142_p9) target bundleno = 289 (0x121), region = 32  ;;  %v344_v2 = vsel (!%p142_p9), %vm342_vm0, 4294967295, %v935_v1  ;;  %p166_p10 = scmp.lt.s32.totalorder (!%p142_p9), %s719_s26, 127  ;;  %vm293_vm2 = vcmask (!%p142_p9), 39936   ;;  %v1052_v21 = vld [vmem:[%s1176_s2] ss:$0 sm:$0xff] (!%p142_p9) }
   0xf   : > { %v345_v3 = vsel (!%p142_p9), %vm343_vm1, %v344_v2, 0  ;;  %s162_s4 = sand.u32 (!%p142_p9), 1, %s925_s13   ;;  %s759_s9 = sshll.u32 (!%p142_p9), %s980_s16, 12 }
  0x10   : > { %v347_v4 = vand.u32 (!%p142_p9), %v345_v3, %v205_v0  ;;  %s718_s7 = sshll.u32 (!%p142_p9), %s162_s4, 8  ;;  %s1124_s17 = scalar_lea.hbm (!%p142_p9), %s1177_s3, %s759_s9 }
  0x11   : > { %s1061_s8 = scalar_lea.vmem (!%p142_p9), [#allocation2], %s718_s7  ;;  %s1133_s19 = scalar_lea.sflag (!%p142_p9), [#allocation3], %s162_s4 }
  0x12   : > { %777 = vmatprep.subr.bf16.mxu0 (!%p142_p9), %v347_v4  ;;  %811 = vmatprep.subr.bf16.mxu1 (!%p142_p9), %v347_v4  ;;  %s652_s10 = sshll.u32 (!%p142_p9), %s1061_s8, 4  ;;  %s936_s24 = smov (!%p142_p9), [#allocation2]   ;;  %s1126_s10 = int_to_ptr.vmem [resolvable:$true] %s652_s10 }
  0x13   : > { %778 = vmatpush3.bf16.msra.mxu0 (!%p142_p9), %v347_v4  ;;  %812 = vmatpush3.bf16.msra.mxu1 (!%p142_p9), %v347_v4  ;;  %s871_s20 = scalar_lea.vmem (!%p142_p9), %s1126_s10, 4096  ;;  %s875_s25 = sshll.u32 (!%p142_p9), %s936_s24, 4  ;;  %s876_s25 = int_to_ptr.vmem [resolvable:$false] %s875_s25 }
  0x14   : > { %p872_p11 = scmp.ne.s32.totalorder (!%p142_p9), %s1126_s10, %s871_s20  ;;  %p878_p0 = scmp.lt.s32.totalorder (!%p142_p9), %s1126_s10, %s876_s25 }
  0x15   : > { %s1185_s26 = smov (!%p166_p10, %s719_s26), 127 }
  0x16   : > { %s720_s27 = sshll.u32 %s1185_s26, 2  ;;  %p873_p12 = pnand %p872_p11, %p997_p5 }
  0x17   : > { %s1014_s30 = scalar_lea.vmem %s1174_s0, %s720_s27  ;;  %s877_s26 = scalar_lea.vmem %s876_s25, 8192 }
  0x18   : > { %v855_v5 = vld [vmem:[%s1014_s30] sm:$0xff]   ;;  %v857_v7 = vld [vmem:[%s1014_s30 + $0x8] sm:$0xff]   ;;  %v859_v9 = vld [vmem:[%s1014_s30 + $0x10] sm:$0xff]   ;;  %p874_p13 = pneg %p873_p12  ;;  %p879_p1 = scmp.lt.s32.totalorder %s877_s26, %s871_s20 }
  0x19   : > { %v856_v6 = vld [vmem:[%s1014_s30 + $0x40] sm:$0xff]   ;;  %779 = vmatprep.mubr.msk.bf16.mxu0 %vm293_vm2, %v855_v5  ;;  %v858_v8 = vld [vmem:[%s1014_s30 + $0x48] sm:$0xff]   ;;  %v860_v10 = vld [vmem:[%s1014_s30 + $0x50] sm:$0xff]  }
  0x1a   : > { %795 = vmatprep.mubr.msk.bf16.mxu1 %vm293_vm2, %v856_v6  ;;  %780 = vmatmul.mubr.msk.bf16.vlgmr.msra.gmra.mrb[0].mxu0 %vm293_vm2, %v857_v7  ;;  %v861_v11 = vld [vmem:[%s1014_s30 + $0x18] sm:$0xff]   ;;  %v863_v13 = vld [vmem:[%s1014_s30 + $0x20] sm:$0xff]   ;;  %v865_v15 = vld [vmem:[%s1014_s30 + $0x28] sm:$0xff]   ;;  %p880_p2 = por %p879_p1, %p878_p0 }
  0x1b   : > { %796 = vmatmul.mubr.msk.bf16.vlgmr.msra.gmra.mrb[0].mxu1 %vm293_vm2, %v858_v8  ;;  %783 = vmatprep.mubr.msk.bf16.mxu0 %vm293_vm2, %v859_v9  ;;  %v862_v12 = vld [vmem:[%s1014_s30 + $0x58] sm:$0xff]   ;;  %v864_v14 = vld [vmem:[%s1014_s30 + $0x60] sm:$0xff]   ;;  %v866_v16 = vld [vmem:[%s1014_s30 + $0x68] sm:$0xff]  }
  0x1c   : > { %799 = vmatprep.mubr.msk.bf16.mxu1 %vm293_vm2, %v860_v10  ;;  %v867_v17 = vld [vmem:[%s1014_s30 + $0x30] sm:$0xff]   ;;  %v869_v19 = vld [vmem:[%s1014_s30 + $0x38] sm:$0xff]   ;;  %p881_p3 = pnand %p880_p2, %p874_p13 }
  0x1d   : > { %v868_v18 = vld [vmem:[%s1014_s30 + $0x70] sm:$0xff]   ;;  %v870_v20 = vld [vmem:[%s1014_s30 + $0x78] sm:$0xff]  }
  0x22   : > { %784 = vmatmul.mubr.msk.bf16.gmra.mrb[4].mxu0 %vm293_vm2, %v861_v11 }
  0x23   : > { %800 = vmatmul.mubr.msk.bf16.gmra.mrb[4].mxu1 %vm293_vm2, %v862_v12  ;;  %787 = vmatprep.mubr.msk.bf16.mxu0 %vm293_vm2, %v863_v13 }
  0x24   : > { %803 = vmatprep.mubr.msk.bf16.mxu1 %vm293_vm2, %v864_v14 }
  0x2a   : > { %788 = vmatmul.mubr.msk.bf16.gmra.mrb[8].mxu0 %vm293_vm2, %v865_v15 }
  0x2b   : > { %804 = vmatmul.mubr.msk.bf16.gmra.mrb[8].mxu1 %vm293_vm2, %v866_v16  ;;  %791 = vmatprep.mubr.msk.bf16.mxu0 %vm293_vm2, %v867_v17 }
  0x2c   : > { %807 = vmatprep.mubr.msk.bf16.mxu1 %vm293_vm2, %v868_v18 }
  0x32   : > { %792 = vmatmul.mubr.msk.bf16.gmra.mrb[12].mxu0 %vm293_vm2, %v869_v19 }
  0x33   : > { %808 = vmatmul.mubr.msk.bf16.gmra.mrb[12].mxu1 %vm293_vm2, %v870_v20 }
  0xed   : > { %v781_v22 = vpop.f32.mrb[0].mxu0 }
  0xee   : > { %v392_v23 = vadd.f32 %v781_v22, %v1052_v21  ;;  %v797_v24 = vpop.f32.mrb[0].mxu1  ;;  %v383_v25 = vpop.f32.mrb[1].mxu0 }
  0xef   : > { %v456_v26 = vadd.f32 %v797_v24, %v1052_v21  ;;  %v384_v27 = vadd.f32 %v1052_v21, %v383_v25  ;;  %v447_v28 = vpop.f32.mrb[1].mxu1  ;;  %v782_v29 = vpop.f32.mrb[2].mxu0 }
  0xf0   : > { %vm512_vm3 = vcmp.ge.f32.partialorder %v392_v23, 0.0  ;;  %v544_v30 = vmul.f32 0.1, %v392_v23  ;;  %v448_v31 = vadd.f32 %v1052_v21, %v447_v28  ;;  %v395_v32 = vadd.f32 %v782_v29, %v1052_v21  ;;  %v798_v33 = vpop.f32.mrb[2].mxu1  ;;  %v386_v34 = vpop.f32.mrb[3].mxu0 }
  0xf1   : > { %vm528_vm4 = vcmp.ge.f32.partialorder %v456_v26, 0.0  ;;  %v560_v35 = vmul.f32 0.1, %v456_v26  ;;  %vm510_vm5 = vcmp.ge.f32.partialorder %v384_v27, 0.0  ;;  %v542_v36 = vmul.f32 0.1, %v384_v27 }
  0xf2   : > { %v576_v37 = vsel %vm512_vm3, %v392_v23, %v544_v30  ;;  %vm526_vm6 = vcmp.ge.f32.partialorder %v448_v31, 0.0  ;;  %v558_v38 = vmul.f32 0.1, %v448_v31  ;;  %vm513_vm7 = vcmp.ge.f32.partialorder %v395_v32, 0.0  ;;  %v450_v39 = vpop.f32.mrb[3].mxu1 }
  0xf3   : > { %608 = vst [vmem:[%s1061_s8 + $0x10] sm:$0xff] %v576_v37  ;;  %v592_v40 = vsel %vm528_vm4, %v456_v26, %v560_v35  ;;  %v574_v41 = vsel %vm510_vm5, %v384_v27, %v542_v36  ;;  %v545_v42 = vmul.f32 0.1, %v395_v32  ;;  %v459_v43 = vadd.f32 %v798_v33, %v1052_v21 }
  0xf4   : > { %624 = vst [vmem:[%s1061_s8 + $0x90] sm:$0xff] %v592_v40  ;;  %606 = vst [vmem:[%s1061_s8] sm:$0xff] %v574_v41  ;;  %v590_v44 = vsel %vm526_vm6, %v448_v31, %v558_v38  ;;  %v387_v45 = vadd.f32 %v1052_v21, %v386_v34  ;;  %v451_v46 = vadd.f32 %v1052_v21, %v450_v39 }
  0xf5   : > { %622 = vst [vmem:[%s1061_s8 + $0x80] sm:$0xff] %v590_v44  ;;  %v577_v47 = vsel %vm513_vm7, %v395_v32, %v545_v42  ;;  %vm529_vm8 = vcmp.ge.f32.partialorder %v459_v43, 0.0  ;;  %v561_v48 = vmul.f32 0.1, %v459_v43  ;;  %v785_v49 = vpop.f32.mrb[4].mxu0 }
  0xf6   : > { %609 = vst [vmem:[%s1061_s8 + $0x18] sm:$0xff] %v577_v47  ;;  %vm511_vm9 = vcmp.ge.f32.partialorder %v387_v45, 0.0  ;;  %v543_v50 = vmul.f32 0.1, %v387_v45  ;;  %vm527_vm10 = vcmp.ge.f32.partialorder %v451_v46, 0.0  ;;  %v408_v53 = vadd.f32 %v785_v49, %v1052_v21  ;;  %v801_v54 = vpop.f32.mrb[4].mxu1 }
  0xf7   : > { %v559_v51 = vmul.f32 0.1, %v451_v46  ;;  %v593_v52 = vsel %vm529_vm8, %v459_v43, %v561_v48  ;;  %v399_v55 = vpop.f32.mrb[5].mxu0  ;;  %v472_v58 = vadd.f32 %v801_v54, %v1052_v21  ;;  %v463_v60 = vpop.f32.mrb[5].mxu1 }
  0xf8   : > { %625 = vst [vmem:[%s1061_s8 + $0x98] sm:$0xff] %v593_v52  ;;  %v575_v56 = vsel %vm511_vm9, %v387_v45, %v543_v50  ;;  %v400_v59 = vadd.f32 %v1052_v21, %v399_v55  ;;  %v786_v61 = vpop.f32.mrb[6].mxu0  ;;  %vm516_vm11 = vcmp.ge.f32.partialorder %v408_v53, 0.0  ;;  %v548_v62 = vmul.f32 0.1, %v408_v53  ;;  %v802_v1 = vpop.f32.mrb[6].mxu1 }
  0xf9   : > { %v591_v57 = vsel %vm527_vm10, %v451_v46, %v559_v51  ;;  %607 = vst [vmem:[%s1061_s8 + $0x8] sm:$0xff] %v575_v56  ;;  %v464_v63 = vadd.f32 %v1052_v21, %v463_v60  ;;  %v411_v0 = vadd.f32 %v786_v61, %v1052_v21  ;;  %v402_v2 = vpop.f32.mrb[7].mxu0  ;;  %vm532_vm12 = vcmp.ge.f32.partialorder %v472_v58, 0.0  ;;  %v466_v7 = vpop.f32.mrb[7].mxu1 }
  0xfa   : > { %623 = vst [vmem:[%s1061_s8 + $0x88] sm:$0xff] %v591_v57  ;;  %v564_v3 = vmul.f32 0.1, %v472_v58  ;;  %vm514_vm13 = vcmp.ge.f32.partialorder %v400_v59, 0.0  ;;  %v546_v4 = vmul.f32 0.1, %v400_v59  ;;  %v580_v5 = vsel %vm516_vm11, %v408_v53, %v548_v62 }
  0xfb   : > { %vm530_vm14 = vcmp.ge.f32.partialorder %v464_v63, 0.0  ;;  %v562_v6 = vmul.f32 0.1, %v464_v63  ;;  %vm517_vm15 = vcmp.ge.f32.partialorder %v411_v0, 0.0  ;;  %612 = vst [vmem:[%s1061_s8 + $0x30] sm:$0xff] %v580_v5  ;;  %v475_v11 = vadd.f32 %v802_v1, %v1052_v21 }
  0xfc   : > { %v596_v8 = vsel %vm532_vm12, %v472_v58, %v564_v3  ;;  %v578_v9 = vsel %vm514_vm13, %v400_v59, %v546_v4  ;;  %v549_v10 = vmul.f32 0.1, %v411_v0  ;;  %v403_v13 = vadd.f32 %v1052_v21, %v402_v2 }
  0xfd   : > { %628 = vst [vmem:[%s1061_s8 + $0xb0] sm:$0xff] %v596_v8  ;;  %610 = vst [vmem:[%s1061_s8 + $0x20] sm:$0xff] %v578_v9  ;;  %v594_v12 = vsel %vm530_vm14, %v464_v63, %v562_v6  ;;  %v467_v14 = vadd.f32 %v1052_v21, %v466_v7  ;;  %v789_v15 = vpop.f32.mrb[8].mxu0  ;;  %vm533_vm0 = vcmp.ge.f32.partialorder %v475_v11, 0.0  ;;  %v565_v17 = vmul.f32 0.1, %v475_v11 }
  0xfe   : > { %626 = vst [vmem:[%s1061_s8 + $0xa0] sm:$0xff] %v594_v12  ;;  %v581_v16 = vsel %vm517_vm15, %v411_v0, %v549_v10  ;;  %v424_v18 = vadd.f32 %v789_v15, %v1052_v21  ;;  %v805_v19 = vpop.f32.mrb[8].mxu1  ;;  %v415_v20 = vpop.f32.mrb[9].mxu0  ;;  %vm515_vm1 = vcmp.ge.f32.partialorder %v403_v13, 0.0  ;;  %v547_v22 = vmul.f32 0.1, %v403_v13 }
  0xff   : > { %613 = vst [vmem:[%s1061_s8 + $0x38] sm:$0xff] %v581_v16  ;;  %vm531_vm2 = vcmp.ge.f32.partialorder %v467_v14, 0.0  ;;  %v563_v23 = vmul.f32 0.1, %v467_v14  ;;  %v597_v24 = vsel %vm533_vm0, %v475_v11, %v565_v17  ;;  %v488_v26 = vadd.f32 %v805_v19, %v1052_v21  ;;  %v479_v27 = vpop.f32.mrb[9].mxu1  ;;  %v790_v28 = vpop.f32.mrb[10].mxu0 }
 0x100   : > { %vm520_vm3 = vcmp.ge.f32.partialorder %v424_v18, 0.0  ;;  %v552_v25 = vmul.f32 0.1, %v424_v18  ;;  %629 = vst [vmem:[%s1061_s8 + $0xb8] sm:$0xff] %v597_v24  ;;  %v579_v29 = vsel %vm515_vm1, %v403_v13, %v547_v22  ;;  %v416_v31 = vadd.f32 %v1052_v21, %v415_v20  ;;  %v806_v33 = vpop.f32.mrb[10].mxu1  ;;  %v418_v34 = vpop.f32.mrb[11].mxu0 }
 0x101   : > { %v595_v30 = vsel %vm531_vm2, %v467_v14, %v563_v23  ;;  %v480_v32 = vadd.f32 %v1052_v21, %v479_v27  ;;  %611 = vst [vmem:[%s1061_s8 + $0x28] sm:$0xff] %v579_v29  ;;  %vm536_vm4 = vcmp.ge.f32.partialorder %v488_v26, 0.0  ;;  %v568_v36 = vmul.f32 0.1, %v488_v26  ;;  %v482_v38 = vpop.f32.mrb[11].mxu1 }
 0x102   : > { %627 = vst [vmem:[%s1061_s8 + $0xa8] sm:$0xff] %v595_v30  ;;  %v584_v35 = vsel %vm520_vm3, %v424_v18, %v552_v25  ;;  %v427_v37 = vadd.f32 %v790_v28, %v1052_v21  ;;  %vm518_vm5 = vcmp.ge.f32.partialorder %v416_v31, 0.0  ;;  %v550_v39 = vmul.f32 0.1, %v416_v31 }
 0x103   : > { %616 = vst [vmem:[%s1061_s8 + $0x50] sm:$0xff] %v584_v35  ;;  %vm534_vm6 = vcmp.ge.f32.partialorder %v480_v32, 0.0  ;;  %v566_v40 = vmul.f32 0.1, %v480_v32  ;;  %v600_v41 = vsel %vm536_vm4, %v488_v26, %v568_v36  ;;  %v491_v43 = vadd.f32 %v806_v33, %v1052_v21 }
 0x104   : > { %vm521_vm7 = vcmp.ge.f32.partialorder %v427_v37, 0.0  ;;  %v553_v42 = vmul.f32 0.1, %v427_v37  ;;  %632 = vst [vmem:[%s1061_s8 + $0xd0] sm:$0xff] %v600_v41  ;;  %v582_v44 = vsel %vm518_vm5, %v416_v31, %v550_v39  ;;  %v419_v46 = vadd.f32 %v1052_v21, %v418_v34 }
 0x105   : > { %v598_v45 = vsel %vm534_vm6, %v480_v32, %v566_v40  ;;  %v483_v47 = vadd.f32 %v1052_v21, %v482_v38  ;;  %v793_v48 = vpop.f32.mrb[12].mxu0  ;;  %614 = vst [vmem:[%s1061_s8 + $0x40] sm:$0xff] %v582_v44  ;;  %vm537_vm8 = vcmp.ge.f32.partialorder %v491_v43, 0.0  ;;  %v569_v50 = vmul.f32 0.1, %v491_v43 }
 0x106   : > { %630 = vst [vmem:[%s1061_s8 + $0xc0] sm:$0xff] %v598_v45  ;;  %v585_v49 = vsel %vm521_vm7, %v427_v37, %v553_v42  ;;  %v440_v51 = vadd.f32 %v793_v48, %v1052_v21  ;;  %v809_v52 = vpop.f32.mrb[12].mxu1  ;;  %v431_v53 = vpop.f32.mrb[13].mxu0  ;;  %vm519_vm9 = vcmp.ge.f32.partialorder %v419_v46, 0.0  ;;  %v551_v54 = vmul.f32 0.1, %v419_v46 }
 0x107   : > { %617 = vst [vmem:[%s1061_s8 + $0x58] sm:$0xff] %v585_v49  ;;  %vm535_vm10 = vcmp.ge.f32.partialorder %v483_v47, 0.0  ;;  %v567_v55 = vmul.f32 0.1, %v483_v47  ;;  %v601_v56 = vsel %vm537_vm8, %v491_v43, %v569_v50  ;;  %v504_v58 = vadd.f32 %v809_v52, %v1052_v21  ;;  %v495_v59 = vpop.f32.mrb[13].mxu1  ;;  %v794_v60 = vpop.f32.mrb[14].mxu0 }
 0x108   : > { %vm524_vm11 = vcmp.ge.f32.partialorder %v440_v51, 0.0  ;;  %v556_v57 = vmul.f32 0.1, %v440_v51  ;;  %633 = vst [vmem:[%s1061_s8 + $0xd8] sm:$0xff] %v601_v56  ;;  %v583_v61 = vsel %vm519_vm9, %v419_v46, %v551_v54  ;;  %v432_v63 = vadd.f32 %v1052_v21, %v431_v53  ;;  %v810_v1 = vpop.f32.mrb[14].mxu1  ;;  %v434_v2 = vpop.f32.mrb[15].mxu0 }
 0x109   : > { %v599_v62 = vsel %vm535_vm10, %v483_v47, %v567_v55  ;;  %v496_v0 = vadd.f32 %v1052_v21, %v495_v59  ;;  %615 = vst [vmem:[%s1061_s8 + $0x48] sm:$0xff] %v583_v61  ;;  %vm540_vm12 = vcmp.ge.f32.partialorder %v504_v58, 0.0  ;;  %v572_v4 = vmul.f32 0.1, %v504_v58  ;;  %v498_v6 = vpop.f32.mrb[15].mxu1 }
 0x10a   : > { %631 = vst [vmem:[%s1061_s8 + $0xc8] sm:$0xff] %v599_v62  ;;  %v588_v3 = vsel %vm524_vm11, %v440_v51, %v556_v57  ;;  %v443_v5 = vadd.f32 %v794_v60, %v1052_v21  ;;  %vm522_vm13 = vcmp.ge.f32.partialorder %v432_v63, 0.0  ;;  %v554_v7 = vmul.f32 0.1, %v432_v63 }
 0x10b   : > { %620 = vst [vmem:[%s1061_s8 + $0x70] sm:$0xff] %v588_v3  ;;  %vm538_vm14 = vcmp.ge.f32.partialorder %v496_v0, 0.0  ;;  %v570_v8 = vmul.f32 0.1, %v496_v0  ;;  %v604_v9 = vsel %vm540_vm12, %v504_v58, %v572_v4  ;;  %v507_v11 = vadd.f32 %v810_v1, %v1052_v21 }
 0x10c   : > { %vm525_vm15 = vcmp.ge.f32.partialorder %v443_v5, 0.0  ;;  %v557_v10 = vmul.f32 0.1, %v443_v5  ;;  %636 = vst [vmem:[%s1061_s8 + $0xf0] sm:$0xff] %v604_v9  ;;  %v586_v12 = vsel %vm522_vm13, %v432_v63, %v554_v7  ;;  %v435_v14 = vadd.f32 %v1052_v21, %v434_v2 }
 0x10d   : > { %v602_v13 = vsel %vm538_vm14, %v496_v0, %v570_v8  ;;  %v499_v15 = vadd.f32 %v1052_v21, %v498_v6  ;;  %618 = vst [vmem:[%s1061_s8 + $0x60] sm:$0xff] %v586_v12  ;;  %vm541_vm0 = vcmp.ge.f32.partialorder %v507_v11, 0.0  ;;  %v573_v17 = vmul.f32 0.1, %v507_v11 }
 0x10e   : > { %634 = vst [vmem:[%s1061_s8 + $0xe0] sm:$0xff] %v602_v13  ;;  %v589_v16 = vsel %vm525_vm15, %v443_v5, %v557_v10  ;;  %vm523_vm1 = vcmp.ge.f32.partialorder %v435_v14, 0.0  ;;  %v555_v18 = vmul.f32 0.1, %v435_v14 }
 0x10f   : > { %621 = vst [vmem:[%s1061_s8 + $0x78] sm:$0xff] %v589_v16  ;;  %vm539_vm2 = vcmp.ge.f32.partialorder %v499_v15, 0.0  ;;  %v571_v19 = vmul.f32 0.1, %v499_v15  ;;  %v605_v21 = vsel %vm541_vm0, %v507_v11, %v573_v17 }
 0x110   : > { %637 = vst [vmem:[%s1061_s8 + $0xf8] sm:$0xff] %v605_v21  ;;  %v587_v20 = vsel %vm523_vm1, %v435_v14, %v555_v18 }
 0x111   : > { %v603_v22 = vsel %vm539_vm2, %v499_v15, %v571_v19  ;;  %619 = vst [vmem:[%s1061_s8 + $0x68] sm:$0xff] %v587_v20 }
 0x112   : > { %635 = vst [vmem:[%s1061_s8 + $0xe8] sm:$0xff] %v603_v22 }
 0x113   : > { %884 = shalt.err (!%p881_p3)
}
 0x114   : > { %s885_s27 = scalar_lea.hbm %s1124_s17, 4096  ;;  %s889_s30 = scalar_lea.hbm %s1177_s3, 16384 }
 0x115   : > { %p886_p4 = scmp.ne.s32.totalorder %s1124_s17, %s885_s27  ;;  %p890_p9 = scmp.lt.u32.totalorder %s1124_s17, %s1177_s3 }
 0x116   : > { %p891_p10 = scmp.lt.u32.totalorder %s889_s30, %s885_s27  ;;  %p893_p12 = scmp.lt.u32.totalorder %s885_s27, %s1124_s17 }
 0x117   : > { %p887_p7 = pnand %p886_p4, %p997_p5 }
 0x118   : > { %p892_p11 = por %p891_p10, %p890_p9 }
 0x119   : > { %p888_p8 = pneg %p887_p7 }
 0x11a   : > { %p894_p13 = por %p893_p12, %p892_p11 }
 0x11c   : > { %p895_p0 = pnand %p894_p13, %p888_p8 }
 0x11e   : > { %898 = shalt.err (!%p895_p0)
}
 0x11f   : > { %s937_s6 = smov 128   ;;  %s938_s7 = smov 8  }
 0x120   : > { %813 = dma.vmem_to_hbm [thread:$0]  (%p997_p5), %s1126_s10, 4096, %s1124_s17, %s1133_s19, %s937_s6, %s937_s6, %s938_s7  }
 0x121 PF: > { %p819_p1 = scmp.ge.s32.totalorder %s933_s15, 2  ;;  %s667_s8 = sand.u32 1, %s921_s12  }
 0x122   : > { %s668_s9 = scalar_lea.sflag [#allocation3], %s667_s8 }
 0x123   : > { %p816_p2 = pnand %p819_p1, %p1001_p6 }
 0x125   : > { %916 = dma.done.wait (!%p816_p2), %s668_s9, 4096  }
 0x126   : > { %918 = vsyncadd (!%p816_p2), %s668_s9, 4294963200  ;;  %p13_p3 = scmp.ge.s32.totalorder %s984_s18, 6   ;;  %s1180_s12 = smov %s925_s13 }
 0x127   : > { %s1181_s13 = smov %s929_s14  ;;  %s1182_s14 = smov %s995_s21 }
 0x128   : > { %s1183_s15 = smov %s984_s18  ;;  %15 = sbr.rel (!%p13_p3) target bundleno = 3 (0x3), region = 67 }
 0x12f   :  { %673 = vsyncpa [#allocation3], 1 }
 0x130   :  { %675 = vsyncpa [#allocation3 + $0x1], 1 }

</bundles_post_ra>
